<compile_context>
chip_gen: v6e
topology: v6e:2x2x1
jax: 0.10.0
libtpu: 0.0.40
codegen_flags: <defaults>
</compile_context>

<pallas_src>
import functools

import jax
import jax.numpy as jnp
import numpy as np
from jax.experimental import pallas as pl
from jax.experimental.pallas import tpu as pltpu

DECAY = 0.01  # module default


def _round_up(x, m):
    return (x + m - 1) // m * m


def _vmem_limit_bytes():
    """Generation-aware scoped-VMEM limit: 3/4 of per-core VMEM capacity
    (v7x: 48 MiB, v5e/v6e: 96 MiB).  Conservative 64 MiB assumption if the
    query is unavailable."""
    cap = 64 * 1024 * 1024
    try:
        info = pltpu.get_tpu_info()
        for name in ("vmem_capacity_bytes", "vmem_size_bytes", "vmem_bytes"):
            v = getattr(info, name, None)
            if v:
                cap = int(v)
                break
    except Exception:
        pass
    return max(32 * 1024 * 1024, (cap * 3) // 4)


def _pick_tiles(n, k, ld, itemsize, budget_bytes):
    """Pick (t_ld, tk).  t_ld gives >= 2 L*D blocks whenever possible so the
    leading 'parallel' grid axis can be split across v7x's two TensorCores.
    tk is the largest multiple of 512 whose double-buffered input tiles
    (+ the double-buffered f32 output block) fit the budget, accounting for
    the sublane padding of the small (N, tk) noise tile."""
    if ld <= 128:
        t_ld = ld                                   # single full block
    else:
        t_ld = min(_round_up(-(-ld // 2), 128), ld)  # ~LD/2, multiple of 128
    n_rows = _round_up(n, 8)                         # sublane-padded noise rows
    fixed = 2 * n_rows * t_ld * 4                    # double-buffered f32 out block
    per_k = 2 * (t_ld + n_rows) * itemsize           # double-buffered w + noise per column
    tk = max(512, ((budget_bytes - fixed) // max(per_k, 1) // 512) * 512)
    return t_ld, min(tk, _round_up(k, 512))


def _grads_matmul_kernel(noise_ref, w_ref, grads_ref, *, k_total, ld_total,
                         tk, t_ld):
    """grads[n, l] = sum_k noise[n, k] * W_gen[l, k] (analytic VJP of the
    linear generator), accumulated over the trailing K grid axis directly into
    the f32 output block."""
    ld = pl.program_id(0)
    kk = pl.program_id(1)

    @pl.when(kk == 0)
    def _():
        grads_ref[...] = jnp.zeros_like(grads_ref)

    noise = noise_ref[...]                      # [N, tk]
    w = w_ref[...]                              # [t_ld, tk]
    cdt = jnp.promote_types(noise.dtype, w.dtype)
    noise = noise.astype(cdt)
    w = w.astype(cdt)

    if k_total % tk != 0:                       # static: ragged K tail
        col = jax.lax.broadcasted_iota(jnp.int32, (1, tk), 1) + kk * tk
        col_ok = col < k_total
        noise = jnp.where(col_ok, noise, 0.0)
        w = jnp.where(col_ok, w, 0.0)
    if ld_total % t_ld != 0:                    # static: ragged L*D tail
        row = jax.lax.broadcasted_iota(jnp.int32, (t_ld, 1), 0) + ld * t_ld
        w = jnp.where(row < ld_total, w, 0.0)   # padded grads columns stay 0

    grads_ref[...] += jax.lax.dot_general(
        noise, w, dimension_numbers=(((1,), (1,)), ((), ())),
        preferred_element_type=jnp.float32)


def _length_loss_kernel(avg_prev_ref, grads_ref, loss_ref, avg_out_ref, ss_ref,
                        *, d_lat, n):
    """Chunked reduction of grads**2 over L*D, then sqrt / EMA / loss."""
    c = pl.program_id(0)

    @pl.when(c == 0)
    def _():
        ss_ref[...] = jnp.zeros_like(ss_ref)

    g = grads_ref[...]                                          # [N, chunk] f32
    ss_ref[...] += jnp.sum(g * g, axis=1, keepdims=True)

    @pl.when(c == pl.num_programs(0) - 1)
    def _():
        # lengths = sqrt((grads**2).mean(2).sum(1)) == sqrt(sum_{L*D} / D)
        lengths = jnp.sqrt(ss_ref[...] * (1.0 / d_lat))         # [N, 1]
        mean_len = jnp.sum(lengths) * (1.0 / n)
        # self.avg = decay * mean(lengths.detach()) + (1 - decay) * self.avg
        avg = DECAY * mean_len + (1.0 - DECAY) * avg_prev_ref[0]
        diff = lengths - avg
        loss_ref[0] = jnp.sum(diff * diff) * (1.0 / n)          # mean((len-avg)^2)
        avg_out_ref[0] = avg


def path_length_loss(noise_flat, w_gen, avg_prev, d_lat, *, tk=None, t_ld=None):
    """noise_flat: [N, K]; w_gen: [L*D, K] (natural layout, NOT transposed);
    avg_prev: [1] f32 running average.  Returns (loss, new_avg) scalars."""
    n, k = noise_flat.shape
    ld, k2 = w_gen.shape
    assert k == k2, "noise_flat and w_gen disagree on K"

    itemsize = jnp.dtype(w_gen.dtype).itemsize
    vmem_limit = _vmem_limit_bytes()
    tile_budget = vmem_limit // 2

    auto_t_ld, auto_tk = _pick_tiles(n, k, ld, itemsize, tile_budget)
    t_ld = auto_t_ld if t_ld is None else t_ld
    tk = auto_tk if tk is None else tk
    t_ld = min(t_ld, ld)
    tk = min(tk, k)
    assert t_ld == ld or t_ld % 128 == 0
    assert tk == k or tk % 128 == 0

    num_ld = -(-ld // t_ld)
    ld_pad = num_ld * t_ld
    num_k = -(-k // tk)

    # ---- Kernel 1: streaming grads matmul (parallel over L*D blocks). ----
    grads_pad = pl.pallas_call(
        functools.partial(_grads_matmul_kernel, k_total=k, ld_total=ld,
                          tk=tk, t_ld=t_ld),
        out_shape=jax.ShapeDtypeStruct((n, ld_pad), jnp.float32),
        grid=(num_ld, num_k),
        in_specs=[
            pl.BlockSpec((n, tk), lambda l, kk: (0, kk)),      # noise_flat
            pl.BlockSpec((t_ld, tk), lambda l, kk: (l, kk)),   # W_gen [L*D, K]
        ],
        out_specs=pl.BlockSpec((n, t_ld), lambda l, kk: (0, l)),
        compiler_params=pltpu.CompilerParams(
            dimension_semantics=("parallel", "arbitrary"),
            vmem_limit_bytes=vmem_limit),
    )(noise_flat, w_gen)

    # ---- Kernel 2: chunked square-reduce + sqrt / EMA / loss epilogue. ----
    chunk = ld_pad
    for cand in range(min(1024, ld_pad), 0, -128):
        if ld_pad % cand == 0:
            chunk = cand
            break
    num_chunks = ld_pad // chunk

    loss, avg_new = pl.pallas_call(
        functools.partial(_length_loss_kernel, d_lat=d_lat, n=n),
        out_shape=(jax.ShapeDtypeStruct((1,), jnp.float32),
                   jax.ShapeDtypeStruct((1,), jnp.float32)),
        grid=(num_chunks,),
        in_specs=[
            pl.BlockSpec(memory_space=pltpu.MemorySpace.SMEM),  # running avg
            pl.BlockSpec((n, chunk), lambda c: (0, c)),         # grads (f32)
        ],
        out_specs=(
            pl.BlockSpec(memory_space=pltpu.MemorySpace.SMEM),  # loss scalar
            pl.BlockSpec(memory_space=pltpu.MemorySpace.SMEM),  # new avg
        ),
        scratch_shapes=[pltpu.VMEM((n, 1), jnp.float32)],       # sum of squares
        compiler_params=pltpu.CompilerParams(
            dimension_semantics=("arbitrary",),
            vmem_limit_bytes=vmem_limit),
    )(avg_prev, grads_pad)
    return loss[0], avg_new[0]


if __name__ == "__main__":
    key = jax.random.PRNGKey(0)
    N, L, D = 2, 8, 32          # dlatent: [N, L, D]
    C, H, W_sp = 4, 16, 16      # gen_out: [N, C, H, W]
    LD, K = L * D, C * H * W_sp
    k1, k2, k3 = jax.random.split(key, 3)

    # Deterministic inputs / synthetic linear generator.
    dlatent = jax.random.normal(k1, (N, L, D), dtype=jnp.float32)
    W_gen = jax.random.normal(k2, (LD, K), dtype=jnp.float32) / float(np.sqrt(LD))
    gen_out = (dlatent.reshape(N, LD) @ W_gen).reshape(N, C, H, W_sp)

    # noise = randn(gen_out.shape) / sqrt(prod(gen_out.shape[2:]))
    noise = (jax.random.normal(k3, gen_out.shape, dtype=jnp.float32)
             / float(np.sqrt(float(np.prod(gen_out.shape[2:])))))
    noise_flat = noise.reshape(N, K)
    avg_prev = jnp.zeros((1,), jnp.float32)        # self.avg = 0

    # Small tiles so the demo exercises the multi-block parallel L*D axis,
    # the multi-step K accumulation, and the masked ragged-K tail
    # (1024 % 384 != 0); real shapes auto-pick generation-aware tiles.
    loss, avg_new = path_length_loss(noise_flat, W_gen, avg_prev, D,
                                     tk=384, t_ld=128)
    loss = jax.block_until_ready(loss)

    # Pure-JAX f32 reference (same analytic grads through the linear generator).
    grads_ref = jnp.einsum("nk,lk->nl", noise_flat, W_gen,
                           precision=jax.lax.Precision.HIGHEST).reshape(N, L, D)
    lengths_ref = jnp.sqrt(jnp.sum(jnp.mean(grads_ref ** 2, axis=2), axis=1))
    avg_ref = DECAY * jnp.mean(lengths_ref) + (1.0 - DECAY) * 0.0
    loss_ref = jnp.mean((lengths_ref - avg_ref) ** 2)

    np.testing.assert_allclose(np.asarray(loss), np.asarray(loss_ref),
                               rtol=2e-2, atol=1e-5)
    np.testing.assert_allclose(np.asarray(avg_new), np.asarray(avg_ref),
                               rtol=2e-2, atol=1e-5)
    print("KERNEL_OK")
</pallas_src>

<mosaic_0001>
module attributes {stable_mosaic.version = 11 : i64} {
  func.func @_grads_matmul_kernel(%arg0: i32, %arg1: i32, %arg2: memref<2x384xf32, #tpu.memory_space<vmem>>, %arg3: memref<128x384xf32, #tpu.memory_space<vmem>>, %arg4: memref<2x128xf32, #tpu.memory_space<vmem>>) attributes {dimension_semantics = [#tpu.dimension_semantics<parallel>, #tpu.dimension_semantics<arbitrary>], iteration_bounds = array<i64: 2, 3>, scalar_prefetch = 0 : i64, scratch_operands = 0 : i64, tpu.core_type = #tpu.core_type<tc>, window_params = [{transform_indices = @transform_0, window_bounds = array<i64: 2, 384>}, {transform_indices = @transform_1, window_bounds = array<i64: 128, 384>}, {transform_indices = @transform_2, window_bounds = array<i64: 2, 128>}]} {
    %c0_i32 = arith.constant 0 : i32
    %0 = arith.cmpi eq, %arg1, %c0_i32 : i32
    %1 = arith.extui %0 : i1 to i32
    %c0_i32_0 = arith.constant 0 : i32
    %2 = arith.cmpi ne, %1, %c0_i32_0 : i32
    scf.if %2 {
      %cst_10 = arith.constant 0.000000e+00 : f32
      %23 = vector.broadcast %cst_10 : f32 to vector<2x128xf32>
      %c0_11 = arith.constant 0 : index
      %c0_12 = arith.constant 0 : index
      %24 = vector.load %arg4[%c0_11, %c0_12] : memref<2x128xf32, #tpu.memory_space<vmem>>, vector<2x128xf32>
      tpu.vector_store %arg4[%c0_11, %c0_12], %23 {strides = array<i32>} : memref<2x128xf32, #tpu.memory_space<vmem>>, vector<2x128xf32>,
    } else {
    }
    %c0 = arith.constant 0 : index
    %c0_1 = arith.constant 0 : index
    %3 = vector.load %arg2[%c0, %c0_1] : memref<2x384xf32, #tpu.memory_space<vmem>>, vector<2x384xf32>
    %c0_2 = arith.constant 0 : index
    %c0_3 = arith.constant 0 : index
    %4 = vector.load %arg3[%c0_2, %c0_3] : memref<128x384xf32, #tpu.memory_space<vmem>>, vector<128x384xf32>
    %5 = tpu.iota {dimensions = array<i32: 1>} : vector<1x384xi32>
    %c384_i32 = arith.constant 384 : i32
    %6 = arith.muli %arg1, %c384_i32 : i32
    %7 = vector.broadcast %6 : i32 to vector<1x384xi32>
    %8 = arith.addi %5, %7 : vector<1x384xi32>
    %c1024_i32 = arith.constant 1024 : i32
    %9 = vector.broadcast %c1024_i32 : i32 to vector<1x384xi32>
    %10 = arith.cmpi slt, %8, %9 : vector<1x384xi32>
    %cst = arith.constant 0.000000e+00 : f32
    %11 = vector.shape_cast %10 : vector<1x384xi1> to vector<1x384xi1>
    %12 = vector.broadcast %11 : vector<1x384xi1> to vector<2x384xi1>
    %13 = vector.broadcast %cst : f32 to vector<2x384xf32>
    %14 = arith.select %12, %3, %13 : vector<2x384xi1>, vector<2x384xf32>
    %cst_4 = arith.constant 0.000000e+00 : f32
    %15 = vector.shape_cast %10 : vector<1x384xi1> to vector<1x384xi1>
    %16 = vector.broadcast %15 : vector<1x384xi1> to vector<128x384xi1>
    %17 = vector.broadcast %cst_4 : f32 to vector<128x384xf32>
    %18 = arith.select %16, %4, %17 : vector<128x384xi1>, vector<128x384xf32>
    %c0_5 = arith.constant 0 : index
    %c0_6 = arith.constant 0 : index
    %19 = vector.load %arg4[%c0_5, %c0_6] : memref<2x128xf32, #tpu.memory_space<vmem>>, vector<2x128xf32>
    %cst_7 = arith.constant dense<0.000000e+00> : vector<2x128xf32>
    %20 = tpu.matmul %14, %18, %cst_7 {dimension_numbers = #tpu.dot_dimension_numbers<[1], [1], [0], [0], [0, 0, 1, 0], [], []>} : vector<2x384xf32>, vector<128x384xf32>, vector<2x128xf32> -> vector<2x128xf32>
    %21 = arith.addf %19, %20 : vector<2x128xf32>
    %c0_8 = arith.constant 0 : index
    %c0_9 = arith.constant 0 : index
    %22 = vector.load %arg4[%c0_8, %c0_9] : memref<2x128xf32, #tpu.memory_space<vmem>>, vector<2x128xf32>
    tpu.vector_store %arg4[%c0_8, %c0_9], %21 {strides = array<i32>} : memref<2x128xf32, #tpu.memory_space<vmem>>, vector<2x128xf32>,
    return
  }
  func.func @transform_0(%arg0: i32, %arg1: i32) -> (i32, i32) {
    %c0_i32 = arith.constant 0 : i32
    %c0_i32_0 = arith.constant 0 : i32
    return %c0_i32, %arg1 : i32, i32
  }
  func.func @transform_1(%arg0: i32, %arg1: i32) -> (i32, i32) {
    %c0_i32 = arith.constant 0 : i32
    return %arg0, %arg1 : i32, i32
  }
  func.func @transform_2(%arg0: i32, %arg1: i32) -> (i32, i32) {
    %c0_i32 = arith.constant 0 : i32
    %c0_i32_0 = arith.constant 0 : i32
    return %c0_i32, %arg0 : i32, i32
  }
}

</mosaic_0001>

<bundles_post_ra>
// kernel: tpu_custom_call.1
= control target key start
LH: loop header
LB: loop body
LE: loop exit
PB: predicated region body
PF: predicated region fallthrough
CT: control target
= control target key end

     0   :  { %s1629_s0 = inlined_call_operand.hbm [shape: f32[2,1024], index: 0, kind: input, shape index: {}]   ;;  %s1630_s1 = inlined_call_operand.hbm [shape: f32[256,1024], index: 1, kind: input, shape index: {}]   ;;  %s1631_s2 = inlined_call_operand.hbm [shape: f32[2,256], index: 2, kind: output, shape index: {}]  }
   0x1   :  { %1639 = sst [smem:[#allocation20_spill]] %s1629_s0 }
   0x2   :  { %7 = vsyncpa [#allocation3], 0 }
   0x3   :  { %9 = vsyncpa [#allocation3 + $0x1], 0 }
   0x4   :  { %10 = vsyncpa [#allocation6], 0 }
   0x5   :  { %12 = vsyncpa [#allocation6 + $0x1], 0 }
   0x6   :  { %13 = vsyncpa [#allocation4], 0 }
   0x7   :  { %15 = vsyncpa [#allocation4 + $0x1], 0  ;;  %s1137_s9 = smov 0   ;;  %s1139_s10 = smov 0  }
   0x8   :  { %s1141_s11 = smov 0   ;;  %s1143_s12 = smov 0  }
   0x9   :  { %s1145_s13 = smov 0   ;;  %s1147_s14 = smov 0  }
   0xa   :  { %s1149_s15 = smov 0   ;;  %s1151_s16 = smov 0  }
   0xb   :  { %s1153_s17 = smov 0   ;;  %s1155_s18 = smov 0  }
   0xc   :  { %s1157_s19 = smov 0   ;;  %s1159_s20 = smov 0  }
   0xd   :  { %s1161_s21 = smov 0   ;;  %s1163_s22 = smov 0  }
   0xe LB: > { %1640 = sst [smem:[#allocation11_spill]] %s1067_s11  ;;  %s648_s23 = sadd.s32 4294967295, %s1111_s22   ;;  %s1111_s22 = sphi %s1163_s22, %s21_s22   ;;  %s1107_s21 = sphi %s1161_s21, %s1678_s21   ;;  %s1103_s20 = sphi %s1159_s20, %s1668_s20   ;;  %s1099_s19 = sphi %s1157_s19, %s1677_s19   ;;  %s1095_s18 = sphi %s1155_s18, %s1676_s18   ;;  %s1091_s17 = sphi %s1153_s17, %s1666_s17   ;;  %s1087_s16 = sphi %s1151_s16, %s1675_s16   ;;  %s1083_s15 = sphi %s1149_s15, %s1674_s15   ;;  %s1079_s14 = sphi %s1147_s14, %s1664_s14   ;;  %s1075_s13 = sphi %s1145_s13, %s1673_s13   ;;  %s1071_s12 = sphi %s1143_s12, %s1672_s12   ;;  %s1067_s11 = sphi %s1141_s11, %s1662_s11   ;;  %s1063_s10 = sphi %s1139_s10, %s1671_s10   ;;  %s1059_s9 = sphi %s1137_s9, %s1670_s9  }
   0xf   : > { %1641 = sst [smem:[#allocation12_spill]] %s1079_s14  ;;  %s30_s25 = sadd.s32 1, %s1103_s20 }
  0x10   : > { %1642 = sst [smem:[#allocation13_spill]] %s1091_s17  ;;  %s33_s26 = sadd.s32 1, %s1107_s21 }
  0x11   : > { %1643 = sst [smem:[#allocation14_spill]] %s1103_s20  ;;  %p31_p0 = scmp.ge.s32.totalorder %s30_s25, 3 }
  0x12   : > { %s40_s27 = sadd.s32 1, %s1091_s17  ;;  %p47_p1 = scmp.ne.s32.totalorder %s1091_s17, %s1087_s16 }
  0x13   : > { %p48_p2 = scmp.eq.s32.totalorder %s1111_s22, 0  ;;  %s1680_s25 = smov (%p31_p0, %s30_s25), 0 }
  0x14   : > { %1644 = sst [smem:[#allocation15_spill]] %s1680_s25  ;;  %s1682_s26 = smov (!%p31_p0, %s33_s26), %s1107_s21 }
  0x15   : > { %s37_s28 = ssub.s32 %s1103_s20, %s1680_s25  ;;  %p1220_p3 = por %p48_p2, %p47_p1 }
  0x16   : > { %p35_p4 = scmp.ge.s32.totalorder %s1682_s26, 2  ;;  %p38_p5 = scmp.eq.s32.totalorder %s37_s28, 0 }
  0x17   : > { %p53_p6 = scmp.ne.s32.totalorder %s1087_s16, %s1083_s15  ;;  %p1227_p7 = scmp.eq.s32.totalorder %s648_s23, 0 }
  0x18   : > { %s1684_s26 = smov (%p35_p4, %s1682_s26), 0  ;;  %s68_s7 = sadd.s32 1, %s1079_s14 }
  0x19   : > { %1647 = sst [smem:[#allocation16_spill]] %s1684_s26  ;;  %p1238_p8 = por %p1227_p7, %p53_p6 }
  0x1a   : > { %s1234_s3 = scalar_select %p38_p5, %s1091_s17, %s40_s27  }
  0x1b   : > { %s63_s5 = ssub.s32 %s1107_s21, %s1684_s26  ;;  %p75_p10 = scmp.ne.s32.totalorder %s1079_s14, %s1075_s13 }
  0x1c   : > { %1648 = sst [smem:[#allocation17_spill]] %s1234_s3  ;;  %s65_s6 = sor.u32 %s63_s5, %s37_s28 }
  0x1d   : > { %p66_p9 = scmp.eq.s32.totalorder %s65_s6, 0  ;;  %p81_p11 = scmp.ne.s32.totalorder %s1075_s13, %s1071_s12 }
  0x1e   : > { %p92_p12 = scmp.eq.s32.totalorder %s63_s5, 0  ;;  %p1254_p13 = por %p75_p10, %p48_p2 }
  0x1f   : > { %s1250_s8 = scalar_select %p66_p9, %s1079_s14, %s68_s7  }
  0x20   : > { %p1260_p0 = por %p81_p11, %p1227_p7  ;;  %s94_s24 = sadd.s32 1, %s1067_s11 }
  0x21   : > { %1650 = sst [smem:[#allocation18_spill]] %s1250_s8  ;;  %p104_p1 = scmp.ne.s32.totalorder %s1067_s11, %s1063_s10 }
  0x22   : > { %s1268_s28 = scalar_select %p92_p12, %s1067_s11, %s94_s24  }
  0x23   : > { %p105_p4 = scmp.eq.s32.totalorder %s648_s23, 5  ;;  %p110_p5 = scmp.ne.s32.totalorder %s1063_s10, %s1059_s9 }
  0x24   : > { %1653 = sst [smem:[#allocation19_spill]] %s1268_s28  ;;  %s1654_s12 = sadd.s32 4294967294, %s1111_s22  }
  0x25   : > { %p111_p6 = scmp.eq.s32.totalorder %s1654_s12, 5  ;;  %p1276_p9 = por %p105_p4, %p104_p1 }
  0x26   : > { %p651_p7 = scmp.ge.s32.totalorder %s1111_s22, 6 }
  0x27   : > { %s1655_s5 = scalar_select %p1276_p9, 1, 0 }
  0x28   : > { %p1280_p2 = por %p111_p6, %p110_p5  ;;  %127 = sbr.rel (%p651_p7) target bundleno = 108 (0x6c), region = 16 }
  0x2a   : > { %s1656_s6 = scalar_select %p1280_p2, 1, 0 }
  0x2d   : > { %130 = sbr.rel (!%p1220_p3) target bundleno = 83 (0x53), region = 20  ;;  %s131_s23 = sand.u32 (%p1220_p3), 1, %s1091_s17  }
  0x2e   : > { %s136_s24 = smul.u32 (%p1220_p3), 3, %s1103_s20  ;;  %s1292_s25 = scalar_lea.sflag (%p1220_p3), [#allocation3], %s131_s23 }
  0x2f   : > { %s779_s30 = smul.u32 (%p1220_p3), 6, %s131_s23 }
  0x30   : > { %s137_s7 = ssub.s32 (%p1220_p3), 8, %s136_s24 }
  0x31   : > { %p138_p10 = scmp.lt.s32.totalorder (%p1220_p3), %s137_s7, 3  ;;  %s135_s3 = scalar_lea.vmem (%p1220_p3), [#allocation2], %s779_s30 }
  0x33   : > { %s1686_s7 = smov (!%p138_p10, %s137_s7), 3 }
  0x34   : > { %s1289_s12 = sshll.u32 %s1686_s7, 5 }
  0x35   : > { %s142_s26 = ssub.s32 96, %s1289_s12 }
  0x36   : > { %143 = vsyncadd %s1292_s25, %s142_s26  ;;  %p653_p3 = scmp.ne.s32.totalorder %s1289_s12, 0  ;;  %s723_s29 = smul.u32 96, %s1103_s20 }
  0x37   : > { %s149_s17 = sshll.u32 %s135_s3, 4  ;;  %s1657_s0 = sld [smem:[#allocation20_spill]]  ;;  %s150_s17 = int_to_ptr.vmem [resolvable:$true] %s149_s17 }
  0x3d   : > { %s146_s28 = scalar_lea.hbm %s1657_s0, %s723_s29  ;;  %s915_s26 = scalar_lea.hbm %s1657_s0, 256 }
  0x3e   : > { %s911_s7 = scalar_lea.hbm %s146_s28, %s1289_s12 }
  0x3f   : > { %p912_p11 = scmp.ne.s32.totalorder %s146_s28, %s911_s7  ;;  %p917_p4 = scmp.lt.s32.totalorder %s915_s26, %s911_s7 }
  0x41   : > { %p913_p12 = pnand %p912_p11, %p653_p3 }
  0x43   : > { %p914_p1 = pneg %p913_p12 }
  0x45   : > { %p919_p5 = pnand %p917_p4, %p914_p1 }
  0x47   : > { %922 = shalt.err (!%p919_p5)
}
  0x48   : > { %s923_s3 = scalar_lea.vmem %s150_s17, %s1289_s12  ;;  %s1113_s8 = smov [#allocation2]  }
  0x49   : > { %p924_p6 = scmp.ne.s32.totalorder %s150_s17, %s923_s3  ;;  %s927_s29 = sshll.u32 %s1113_s8, 4  ;;  %s928_s29 = int_to_ptr.vmem [resolvable:$false] %s927_s29 }
  0x4a   : > { %s929_s24 = scalar_lea.vmem %s928_s29, 192  ;;  %p930_p11 = scmp.lt.s32.totalorder %s150_s17, %s928_s29 }
  0x4b   : > { %p925_p7 = pnand %p924_p6, %p653_p3  ;;  %p931_p12 = scmp.lt.s32.totalorder %s929_s24, %s923_s3 }
  0x4d   : > { %p926_p10 = pneg %p925_p7  ;;  %p932_p2 = por %p931_p12, %p930_p11 }
  0x4f   : > { %p933_p9 = pnand %p932_p2, %p926_p10 }
  0x51   : > { %936 = shalt.err (!%p933_p9)
}
  0x52   : > { %152 = dma.hbm_to_vmem [thread:$0]  (%p653_p3), %s146_s28, %s1289_s12, %s150_s17, %s1292_s25  }
  0x53 PF: > { %155 = sbr.rel (!%p1254_p13) target bundleno = 108 (0x6c), region = 24  ;;  %s156_s7 = sand.u32 (%p1254_p13), 1, %s1079_s14  }
  0x54   : > { %s162_s23 = smul.u32 (%p1254_p13), 3, %s1103_s20  ;;  %s1323_s29 = scalar_lea.sflag (%p1254_p13), [#allocation6], %s156_s7 }
  0x55   : > { %s780_s30 = smul.u32 (%p1254_p13), 384, %s156_s7 }
  0x56   : > { %s163_s26 = ssub.s32 (%p1254_p13), 8, %s162_s23 }
  0x57   : > { %p164_p1 = scmp.lt.s32.totalorder (%p1254_p13), %s163_s26, 3  ;;  %s160_s17 = scalar_lea.vmem (%p1254_p13), [#allocation5], %s780_s30 }
  0x59   : > { %s1688_s26 = smov (!%p164_p1, %s163_s26), 3 }
  0x5a   : > { %s1320_s3 = sshll.u32 %s1688_s26, 11 }
  0x5b   : > { %s168_s8 = ssub.s32 6144, %s1320_s3 }
  0x5c   : > { %169 = vsyncadd %s1323_s29, %s168_s8  ;;  %p659_p13 = scmp.ne.s32.totalorder %s1320_s3, 0  ;;  %s724_s25 = sshll.u32 %s1107_s21, 7 }
  0x5d   : > { %s172_s15 = sadd.s32 %s724_s25, %s162_s23  ;;  %s662_s28 = sshll.u32 %s1688_s26, 3 }
  0x5e   : > { %s661_s12 = sshll.u32 %s172_s15, 7  ;;  %s177_s24 = sshll.u32 %s160_s17, 4  ;;  %s178_s24 = int_to_ptr.vmem [resolvable:$true] %s177_s24 }
  0x5f   : > { %s174_s14 = scalar_lea.hbm %s1630_s1, %s661_s12  ;;  %s949_s7 = scalar_lea.vmem %s178_s24, %s1320_s3 }
  0x60   : > { %p950_p9 = scmp.ne.s32.totalorder %s178_s24, %s949_s7  ;;  %s1114_s30 = smov [#allocation5]  }
  0x61   : > { %s953_s8 = sshll.u32 %s1114_s30, 4  ;;  %s954_s8 = int_to_ptr.vmem [resolvable:$false] %s953_s8 }
  0x62   : > { %p951_p2 = pnand %p950_p9, %p659_p13  ;;  %s955_s11 = scalar_lea.vmem %s954_s8, 12288 }
  0x63   : > { %p956_p4 = scmp.lt.s32.totalorder %s178_s24, %s954_s8  ;;  %p957_p5 = scmp.lt.s32.totalorder %s955_s11, %s949_s7 }
  0x64   : > { %p952_p3 = pneg %p951_p2 }
  0x65   : > { %p958_p6 = por %p957_p5, %p956_p4 }
  0x67   : > { %p959_p7 = pnand %p958_p6, %p952_p3 }
  0x69   : > { %962 = shalt.err (!%p959_p7)
}
  0x6a   : > { %s1115_s23 = smov 1024   ;;  %s1116_s0 = smov 384  }
  0x6b   : > { %183 = dma.hbm_to_vmem [thread:$0]  (%p659_p13), %s174_s14, %s1320_s3, %s178_s24, %s1323_s29, %s1115_s23, %s1116_s0, %s662_s28  }
  0x6c PF: > { %p665_p10 = scmp.ge.s32.totalorder %s1111_s22, 1  ;;  %p185_p11 = scmp.lt.s32.totalorder %s1111_s22, 7 }
  0x6e   : > { %p186_p12 = pnand %p665_p10, %p185_p11 }
  0x6f   : > { %s191_s11 = sand.u32 (!%p186_p12), 1, %s1087_s16  }
  0x70   : > { %189 = sbr.rel (%p186_p12) target bundleno = 415 (0x19f), region = 28  ;;  %s192_s26 = scalar_lea.sflag (!%p186_p12), [#allocation3], %s191_s11 }
  0x71   : > { %s1342_s20 = smul.u32 (!%p186_p12), 6, %s191_s11 }
  0x73   : > { %s195_s17 = scalar_lea.vmem (!%p186_p12), [#allocation2], %s1342_s20 }
  0x75   : > { %1046 = dma.done.wait (%p1238_p8), %s192_s26, 96  }
  0x76   : > { %1048 = vsyncadd (%p1238_p8), %s192_s26, 4294967200  ;;  %s200_s14 = sand.u32 1, %s1075_s13  }
  0x77   : > { %s782_s3 = smul.u32 384, %s200_s14  ;;  %s201_s29 = scalar_lea.sflag [#allocation6], %s200_s14 }
  0x79   : > { %s1350_s25 = scalar_lea.vmem [#allocation5], %s782_s3 }
  0x7a   : > { %1050 = dma.done.wait (%p1260_p0), %s201_s29, 6144  }
  0x7b   : > { %1052 = vsyncadd (%p1260_p0), %s201_s29, 4294961152  ;;  %s227_s15 = sand.u32 1, %s1063_s10   ;;  %p667_p8 = scmp.ne.s32.totalorder %s1095_s18, 0 }
  0x7c   : > { %s666_s28 = sshll.u32 %s227_s15, 1 }
  0x7d   : > { %s1359_s12 = scalar_lea.vmem [#allocation7], %s666_s28  ;;  %244 = sbr.rel (%p667_p8) target bundleno = 132 (0x84), region = 40 }
  0x82   : > { %v1117_v0 = vmov 0.0  }
  0x83   : > { %245 = vst [vmem:[%s1359_s12] sm:$0x3] %v1117_v0 }
  0x84 PF: > { %v295_v1 = vlaneseq  ;;  %s299_s4 = smul.u32 384, %s1095_s18  ;;  %v1118_v2 = vmov 0.0   ;;  %vm1119_vm0 = vmmov 0   ;;  %v1120_v8 = vmov 1983009808   ;;  %v293_v10 = vld [vmem:[%s1350_s25 + $0x170] sm:$0xff] }
  0x85   : > { %744 = vmatprep.subr.mxu1 %v1118_v2  ;;  %776 = vmatprep.mubr.msk.f32.mxu1 %vm1119_vm0, %v1118_v2  ;;  %v316_v9 = vunpack.c.l.s4 %v1120_v8  ;;  %v294_v12 = vld [vmem:[%s1350_s25 + $0x178] sm:$0xff]  ;;  %v292_v14 = vld [vmem:[%s1350_s25 + $0x168] sm:$0xff]  ;;  %v291_v18 = vld [vmem:[%s1350_s25 + $0x160] sm:$0xff]  ;;  %s720_s18 = sshll.u32 %s1099_s19, 5  ;;  %s541_s27 = sshll.u32 %s1359_s12, 4  ;;  %s542_s27 = int_to_ptr.vmem [resolvable:$true] %s541_s27 }
  0x86   : > { %v296_v3 = vand.u32 127, %v295_v1  ;;  %v300_v4 = vstv %s299_s4  ;;  %v290_v15 = vld [vmem:[%s1350_s25 + $0x158] sm:$0xff]  ;;  %v319_v17 = vshrl.u32 %v295_v1, 7  ;;  %v289_v19 = vld [vmem:[%s1350_s25 + $0x150] sm:$0xff]  ;;  %v287_v20 = vld [vmem:[%s1350_s25 + $0x140] sm:$0xff]  ;;  %s539_s30 = scalar_lea.hbm %s1631_s2, %s720_s18  ;;  %s528_s8 = scalar_lea.sflag [#allocation4], %s227_s15 }
  0x87   : > { %v317_v16 = vunpack.c.0.s8 %v316_v9  ;;  %v288_v22 = vld [vmem:[%s1350_s25 + $0x148] sm:$0xff]  ;;  %v286_v23 = vld [vmem:[%s1350_s25 + $0x138] sm:$0xff]  ;;  %v285_v27 = vld [vmem:[%s1350_s25 + $0x130] sm:$0xff]  ;;  %s963_s23 = scalar_lea.vmem %s542_s27, 32  ;;  %p1658_p1 = scmp.ne.s32.totalorder %s1655_s5, 0 }
  0x88   : > { %v297_v5 = vadd.s32 128, %v296_v3  ;;  %v298_v6 = vadd.s32 256, %v296_v3  ;;  %v1366_v7 = vadd.s32 %v300_v4, %v296_v3  ;;  %v284_v24 = vld [vmem:[%s1350_s25 + $0x128] sm:$0xff]  ;;  %v1405_v25 = vld [vmem:[%s195_s17] sm:$0x3f]  ;;  %v283_v28 = vld [vmem:[%s1350_s25 + $0x120] sm:$0xff]  ;;  %p964_p0 = scmp.ne.s32.totalorder %s542_s27, %s963_s23 }
  0x89   : > { %v1393_v21 = vsub.s32 %v317_v16, %v319_v17  ;;  %v281_v30 = vld [vmem:[%s1350_s25 + $0x110] sm:$0xff]  ;;  %v282_v31 = vld [vmem:[%s1350_s25 + $0x118] sm:$0xff]  ;;  %v280_v32 = vld [vmem:[%s1350_s25 + $0x108] sm:$0xff]  ;;  %v314_v0 = vcombine.high %v1405_v25, %v1405_v25  ;;  %s1121_s0 = smov [#allocation7]  }
  0x8a   : > { %v1369_v11 = vadd.s32 %v300_v4, %v297_v5  ;;  %v1372_v13 = vadd.s32 %v300_v4, %v298_v6  ;;  %vm304_vm1 = vcmp.lt.s32.totalorder %v1366_v7, 1024  ;;  %v278_v33 = vld [vmem:[%s1350_s25 + $0xf8] sm:$0xff]  ;;  %v279_v34 = vld [vmem:[%s1350_s25 + $0x100] sm:$0xff]  ;;  %v277_v35 = vld [vmem:[%s1350_s25 + $0xf0] sm:$0xff]  ;;  %p965_p13 = pnand %p964_p0, %p1658_p1  ;;  %s967_s19 = sshll.u32 %s1121_s0, 4  ;;  %s968_s19 = int_to_ptr.vmem [resolvable:$false] %s967_s19 }
  0x8b   : > { %v1411_v26 = vrot.slane %v1405_v25, %v1393_v21  ;;  %v275_v36 = vld [vmem:[%s1350_s25 + $0xe0] sm:$0xff]  ;;  %v276_v37 = vld [vmem:[%s1350_s25 + $0xe8] sm:$0xff]  ;;  %v274_v38 = vld [vmem:[%s1350_s25 + $0xd8] sm:$0xff]  ;;  %v328_v4 = vrot.slane %v314_v0, %v1393_v21  ;;  %s969_s11 = scalar_lea.vmem %s968_s19, 64  ;;  %p970_p2 = scmp.lt.s32.totalorder %s542_s27, %s968_s19 }
  0x8c   : > { %vm305_vm2 = vcmp.lt.s32.totalorder %v1369_v11, 1024  ;;  %vm306_vm3 = vcmp.lt.s32.totalorder %v1372_v13, 1024  ;;  %v272_v39 = vld [vmem:[%s1350_s25 + $0xc8] sm:$0xff]  ;;  %v273_v40 = vld [vmem:[%s1350_s25 + $0xd0] sm:$0xff]  ;;  %v271_v41 = vld [vmem:[%s1350_s25 + $0xc0] sm:$0xff]  ;;  %p966_p9 = pneg %p965_p13  ;;  %p971_p3 = scmp.lt.s32.totalorder %s969_s11, %s963_s23 }
  0x8d   : > { %668 = vmatprep.subr.msk.mxu0 %vm305_vm2, %v293_v10  ;;  %745 = vmatpush3.xpose.msk.msra.mxu1 %vm306_vm3, %v294_v12  ;;  %v329_v29 = vcombine.high %v1411_v26, %v1411_v26  ;;  %v269_v42 = vld [vmem:[%s1350_s25 + $0xb0] sm:$0xff]  ;;  %v270_v43 = vld [vmem:[%s1350_s25 + $0xb8] sm:$0xff]  ;;  %v268_v44 = vld [vmem:[%s1350_s25 + $0xa8] sm:$0xff] }
  0x8e   : > { %669 = vmatpush1.xpose.msk.msra.mxu0 %vm304_vm1, %v292_v14  ;;  %746 = vmatprep.subr.mxu1 %v1118_v2  ;;  %v266_v45 = vld [vmem:[%s1350_s25 + $0x98] sm:$0xff]  ;;  %v267_v46 = vld [vmem:[%s1350_s25 + $0xa0] sm:$0xff]  ;;  %v265_v47 = vld [vmem:[%s1350_s25 + $0x90] sm:$0xff]  ;;  %p972_p4 = por %p971_p3, %p970_p2 }
  0x8f   : > { %670 = vmatprep.subr.msk.mxu0 %vm305_vm2, %v290_v15  ;;  %700 = vmatprep.mubr.msk.f32.mxu0 %vm305_vm2, %v329_v29  ;;  %v263_v48 = vld [vmem:[%s1350_s25 + $0x80] sm:$0xff]  ;;  %v264_v49 = vld [vmem:[%s1350_s25 + $0x88] sm:$0xff]  ;;  %v262_v50 = vld [vmem:[%s1350_s25 + $0x78] sm:$0xff] }
  0x90   : > { %v260_v51 = vld [vmem:[%s1350_s25 + $0x68] sm:$0xff]  ;;  %v261_v52 = vld [vmem:[%s1350_s25 + $0x70] sm:$0xff]  ;;  %v259_v53 = vld [vmem:[%s1350_s25 + $0x60] sm:$0xff]  ;;  %p973_p5 = pnand %p972_p4, %p966_p9 }
  0x91   : > { %747 = vmatpush3.xpose.msk.msra.mxu1 %vm306_vm3, %v291_v18  ;;  %v257_v54 = vld [vmem:[%s1350_s25 + $0x50] sm:$0xff]  ;;  %v258_v55 = vld [vmem:[%s1350_s25 + $0x58] sm:$0xff]  ;;  %v256_v56 = vld [vmem:[%s1350_s25 + $0x48] sm:$0xff] }
  0x92   : > { %671 = vmatpush1.xpose.msk.msra.mxu0 %vm304_vm1, %v289_v19  ;;  %748 = vmatprep.subr.mxu1 %v1118_v2  ;;  %v254_v57 = vld [vmem:[%s1350_s25 + $0x38] sm:$0xff]  ;;  %v255_v58 = vld [vmem:[%s1350_s25 + $0x40] sm:$0xff]  ;;  %v253_v59 = vld [vmem:[%s1350_s25 + $0x30] sm:$0xff] }
  0x93   : > { %672 = vmatprep.subr.msk.mxu0 %vm305_vm2, %v287_v20  ;;  %v251_v60 = vld [vmem:[%s1350_s25 + $0x20] sm:$0xff]  ;;  %v252_v61 = vld [vmem:[%s1350_s25 + $0x28] sm:$0xff]  ;;  %v250_v62 = vld [vmem:[%s1350_s25 + $0x18] sm:$0xff] }
  0x94   : > { %v248_v63 = vld [vmem:[%s1350_s25 + $0x8] sm:$0xff]  ;;  %v249_v1 = vld [vmem:[%s1350_s25 + $0x10] sm:$0xff]  ;;  %v247_v3 = vld [vmem:[%s1350_s25] sm:$0xff] }
  0x95   : > { %749 = vmatpush3.xpose.msk.msra.mxu1 %vm306_vm3, %v288_v22  ;;  %v384_v5 = vld [vmem:[%s1359_s12] sm:$0x3] }
  0x96   : > { %673 = vmatpush1.xpose.msk.msra.mxu0 %vm304_vm1, %v286_v23  ;;  %750 = vmatprep.subr.mxu1 %v1118_v2 }
  0x97   : > { %674 = vmatprep.subr.msk.mxu0 %vm305_vm2, %v284_v24 }
  0x99   : > { %751 = vmatpush3.xpose.msk.msra.mxu1 %vm306_vm3, %v285_v27 }
  0x9a   : > { %675 = vmatpush1.xpose.msk.msra.mxu0 %vm304_vm1, %v283_v28  ;;  %752 = vmatprep.subr.mxu1 %v1118_v2 }
  0x9b   : > { %676 = vmatprep.subr.msk.mxu0 %vm305_vm2, %v281_v30 }
  0x9d   : > { %753 = vmatpush3.xpose.msk.msra.mxu1 %vm306_vm3, %v282_v31 }
  0x9e   : > { %677 = vmatpush1.xpose.msk.msra.mxu0 %vm304_vm1, %v280_v32  ;;  %754 = vmatprep.subr.mxu1 %v1118_v2 }
  0x9f   : > { %678 = vmatprep.subr.msk.mxu0 %vm305_vm2, %v278_v33 }
  0xa1   : > { %755 = vmatpush3.xpose.msk.msra.mxu1 %vm306_vm3, %v279_v34 }
  0xa2   : > { %679 = vmatpush1.xpose.msk.msra.mxu0 %vm304_vm1, %v277_v35  ;;  %756 = vmatprep.subr.mxu1 %v1118_v2 }
  0xa3   : > { %680 = vmatprep.subr.msk.mxu0 %vm305_vm2, %v275_v36 }
  0xa5   : > { %757 = vmatpush3.xpose.msk.msra.mxu1 %vm306_vm3, %v276_v37 }
  0xa6   : > { %681 = vmatpush1.xpose.msk.msra.mxu0 %vm304_vm1, %v274_v38  ;;  %758 = vmatprep.subr.mxu1 %v1118_v2 }
  0xa7   : > { %682 = vmatprep.subr.msk.mxu0 %vm305_vm2, %v272_v39 }
  0xa9   : > { %759 = vmatpush3.xpose.msk.msra.mxu1 %vm306_vm3, %v273_v40 }
  0xaa   : > { %683 = vmatpush1.xpose.msk.msra.mxu0 %vm304_vm1, %v271_v41  ;;  %760 = vmatprep.subr.mxu1 %v1118_v2 }
  0xab   : > { %684 = vmatprep.subr.msk.mxu0 %vm305_vm2, %v269_v42 }
  0xad   : > { %761 = vmatpush3.xpose.msk.msra.mxu1 %vm306_vm3, %v270_v43 }
  0xae   : > { %685 = vmatpush1.xpose.msk.msra.mxu0 %vm304_vm1, %v268_v44  ;;  %762 = vmatprep.subr.mxu1 %v1118_v2 }
  0xaf   : > { %686 = vmatprep.subr.msk.mxu0 %vm305_vm2, %v266_v45 }
  0xb1   : > { %763 = vmatpush3.xpose.msk.msra.mxu1 %vm306_vm3, %v267_v46 }
  0xb2   : > { %687 = vmatpush1.xpose.msk.msra.mxu0 %vm304_vm1, %v265_v47  ;;  %764 = vmatprep.subr.mxu1 %v1118_v2 }
  0xb3   : > { %688 = vmatprep.subr.msk.mxu0 %vm305_vm2, %v263_v48 }
  0xb5   : > { %765 = vmatpush3.xpose.msk.msra.mxu1 %vm306_vm3, %v264_v49 }
  0xb6   : > { %689 = vmatpush1.xpose.msk.msra.mxu0 %vm304_vm1, %v262_v50  ;;  %766 = vmatprep.subr.mxu1 %v1118_v2 }
  0xb7   : > { %690 = vmatprep.subr.msk.mxu0 %vm305_vm2, %v260_v51 }
  0xb9   : > { %767 = vmatpush3.xpose.msk.msra.mxu1 %vm306_vm3, %v261_v52 }
  0xba   : > { %691 = vmatpush1.xpose.msk.msra.mxu0 %vm304_vm1, %v259_v53  ;;  %768 = vmatprep.subr.mxu1 %v1118_v2 }
  0xbb   : > { %692 = vmatprep.subr.msk.mxu0 %vm305_vm2, %v257_v54 }
  0xbd   : > { %769 = vmatpush3.xpose.msk.msra.mxu1 %vm306_vm3, %v258_v55 }
  0xbe   : > { %693 = vmatpush1.xpose.msk.msra.mxu0 %vm304_vm1, %v256_v56  ;;  %770 = vmatprep.subr.mxu1 %v1118_v2 }
  0xbf   : > { %694 = vmatprep.subr.msk.mxu0 %vm305_vm2, %v254_v57 }
  0xc1   : > { %771 = vmatpush3.xpose.msk.msra.mxu1 %vm306_vm3, %v255_v58 }
  0xc2   : > { %695 = vmatpush1.xpose.msk.msra.mxu0 %vm304_vm1, %v253_v59  ;;  %772 = vmatprep.subr.mxu1 %v1118_v2 }
  0xc3   : > { %696 = vmatprep.subr.msk.mxu0 %vm305_vm2, %v251_v60 }
  0xc5   : > { %773 = vmatpush3.xpose.msk.msra.mxu1 %vm306_vm3, %v252_v61 }
  0xc6   : > { %697 = vmatpush1.xpose.msk.msra.mxu0 %vm304_vm1, %v250_v62  ;;  %774 = vmatprep.subr.mxu1 %v1118_v2 }
  0xc7   : > { %698 = vmatprep.subr.msk.mxu0 %vm305_vm2, %v248_v63 }
  0xc9   : > { %775 = vmatpush3.xpose.msk.msra.mxu1 %vm306_vm3, %v249_v1 }
  0xca   : > { %699 = vmatpush1.xpose.msk.msra.mxu0 %vm304_vm1, %v247_v3 }
  0xcc   : > { %777 = vmatmul.mubr.msk.f32.vlgmr.msra.gmra.mxu1 %vm306_vm3, %v328_v4 }
  0xcd   : > { %701 = vmatmul.mubr.msk.f32.vlgmr.msra.gmra.mxu0 %vm304_vm1, %v1411_v26 }
 0x18c   : > { %v521_v2 = vpop.f32.mrf.mxu1 }
 0x18d   : > { %v451_v6 = vpop.f32.mrf.mxu0 }
 0x18e   : > { %v522_v8 = vadd.f32 %v521_v2, %v451_v6  ;;  %v778_v9 = vpop.f32.mrf.mxu1 }
 0x18f   : > { %v453_v10 = vpop.f32.mrf.mxu0 }
 0x190   : > { %v525_v11 = vadd.f32 %v522_v8, %v384_v5 }
 0x192   : > { %526 = vst [vmem:[%s1359_s12] sm:$0x3] %v525_v11 }
 0x193   : > { %976 = shalt.err (!%p973_p5)
}
 0x194   : > { %s977_s20 = scalar_lea.hbm %s539_s30, 32  ;;  %s981_s14 = scalar_lea.hbm %s1631_s2, 64 }
 0x195   : > { %p978_p6 = scmp.ne.s32.totalorder %s539_s30, %s977_s20  ;;  %p982_p11 = scmp.lt.s32.totalorder %s539_s30, %s1631_s2 }
 0x196   : > { %p983_p12 = scmp.lt.s32.totalorder %s981_s14, %s977_s20 }
 0x197   : > { %p979_p7 = pnand %p978_p6, %p1658_p1 }
 0x198   : > { %p984_p8 = por %p983_p12, %p982_p11 }
 0x199   : > { %p980_p10 = pneg %p979_p7 }
 0x19b   : > { %p985_p0 = pnand %p984_p8, %p980_p10 }
 0x19d   : > { %988 = shalt.err (!%p985_p0)
}
 0x19e   : > { %785 = dma.vmem_to_hbm [thread:$0]  (%p1658_p1), %s542_s27, 32, %s539_s30, %s528_s8  }
 0x19f PF: > { %p791_p13 = scmp.ge.s32.totalorder %s1111_s22, 2  ;;  %s553_s25 = sand.u32 1, %s1059_s9  }
 0x1a0   : > { %p1659_p9 = scmp.ne.s32.totalorder %s1656_s6, 0  ;;  %s554_s15 = scalar_lea.sflag [#allocation4], %s553_s25 }
 0x1a2   : > { %p788_p2 = pnand %p791_p13, %p1659_p9 }
 0x1a4   : > { %p789_p3 = pneg %p788_p2 }
 0x1a6   : > { %1054 = dma.done.wait (%p789_p3), %s554_s15, 32  }
 0x1a7   : > { %1056 = vsyncadd (%p789_p3), %s554_s15, 4294967264  ;;  %s21_s22 = sadd.s32 1, %s1111_s22   ;;  %s1661_s5 = sld [smem:[#allocation11_spill]] }
 0x1a8   : > { %p1582_p4 = scmp.ge.s32.totalorder %s21_s22, 8   ;;  %s1662_s11 = sld [smem:[#allocation19_spill]] }
 0x1a9   : > { %s1663_s4 = sld [smem:[#allocation12_spill]]  ;;  %s1670_s9 = smov %s1063_s10 }
 0x1aa   : > { %s1664_s14 = sld [smem:[#allocation18_spill]]  ;;  %s1672_s12 = smov %s1075_s13 }
 0x1ab   : > { %s1665_s18 = sld [smem:[#allocation13_spill]]  ;;  %s1674_s15 = smov %s1087_s16 }
 0x1ac   : > { %s1666_s17 = sld [smem:[#allocation17_spill]]  ;;  %s1677_s19 = smov %s1107_s21 }
 0x1ad   : > { %s1667_s6 = sld [smem:[#allocation14_spill]]  ;;  %s1671_s10 = smov %s1661_s5 }
 0x1ae   : > { %s1668_s20 = sld [smem:[#allocation15_spill]] }
 0x1af   : > { %s1669_s27 = sld [smem:[#allocation16_spill]]  ;;  %s1673_s13 = smov %s1663_s4 }
 0x1b1   : > { %s1675_s16 = smov %s1665_s18  ;;  %20 = sbr.rel (!%p1582_p4) target bundleno = 14 (0xe), region = 90 }
 0x1b3   : > { %s1676_s18 = smov %s1667_s6 }
 0x1b5   : > { %s1678_s21 = smov %s1669_s27 }
 0x1b6   :  { %559 = vsyncpa [#allocation3], 1 }
 0x1b7   :  { %561 = vsyncpa [#allocation3 + $0x1], 1 }
 0x1b8   :  { %562 = vsyncpa [#allocation6], 1 }
 0x1b9   :  { %564 = vsyncpa [#allocation6 + $0x1], 1 }
 0x1ba   :  { %565 = vsyncpa [#allocation4], 1 }
 0x1bb   :  { %567 = vsyncpa [#allocation4 + $0x1], 1 }

</bundles_post_ra>
